<compile_context>
chip_gen: v5e
topology: v5e:2x2
jax: 0.10.0
libtpu: 0.0.40
codegen_flags: <defaults>
</compile_context>

<pallas_src>
import functools

import jax
import jax.numpy as jnp
from jax.experimental import pallas as pl
from jax.experimental.pallas import tpu as pltpu

_LANE = 128
_SUBLANE = 8
# Cross-generation safe on-chip budget: v7x has 64 MiB VMEM/TC, v5e/v6e 128 MiB.
_VMEM_BUDGET = 44 * 1024 * 1024
_VMEM_LIMIT = 48 * 1024 * 1024


def _round_up(x, m):
    return ((x + m - 1) // m) * m


def _pad2(x, rows, cols):
    return jnp.pad(x, ((0, rows - x.shape[0]), (0, cols - x.shape[1])))


def _pick_tile(n, prefer, multiple):
    """Largest multiple of `multiple` that divides n and is <= prefer."""
    t = max(min(prefer, n), multiple)
    t = (t // multiple) * multiple
    while t > multiple and n % t != 0:
        t -= multiple
    return t


def _agg_tiles(n_pad):
    # tk (reduction axis, lane dim of A): large tiles amortize per-step
    # pipeline overhead; must be a 128-multiple dividing n_pad.
    tk = _pick_tile(n_pad, 2048, _LANE)
    # tm (row / "parallel" axis): <=256 for MXU-friendly M, but keep >= 2 row
    # tiles so v7x's second TensorCore gets work.
    tm = _pick_tile(n_pad, min(256, max(n_pad // 2, _SUBLANE)), _SUBLANE)
    return tm, tk


# --------------------------------------------------------------------------
# Kernel 1: feature-side matmul  XW = X @ W  (hoisted out of the K-reduction;
# single grid step when it fits VMEM, else row tiles).
# --------------------------------------------------------------------------
def _feature_matmul_kernel(x_ref, w_ref, o_ref):
    o_ref[...] = jnp.dot(
        x_ref[...], w_ref[...], preferred_element_type=jnp.float32
    ).astype(o_ref.dtype)


def _feature_matmul(x, w):
    n, fin = x.shape
    fout = w.shape[1]

    def vmem_est(t):
        return 2 * (t * fin * 2) + 2 * (fin * fout * 2) + 2 * (t * fout * 2)

    tm = n if vmem_est(n) <= _VMEM_BUDGET else _pick_tile(n, 512, _SUBLANE)
    return pl.pallas_call(
        _feature_matmul_kernel,
        out_shape=jax.ShapeDtypeStruct((n, fout), jnp.bfloat16),
        grid=(n // tm,),
        in_specs=[
            pl.BlockSpec((tm, fin), lambda i: (i, 0)),
            pl.BlockSpec((fin, fout), lambda i: (0, 0)),
        ],
        out_specs=pl.BlockSpec((tm, fout), lambda i: (i, 0)),
        compiler_params=pltpu.CompilerParams(
            dimension_semantics=("parallel",),
            vmem_limit_bytes=_VMEM_LIMIT,
        ),
    )(x, w)


# --------------------------------------------------------------------------
# Kernel 2: tiled aggregation  OUT = A_hat @ XW + b  (+ optional relu).
# grid = (row tiles, reduction tiles).  When the output is f32 we accumulate
# directly into the resident output block (no scratch); for bf16 output we
# keep an f32 VMEM scratch accumulator.  XW is VMEM-resident when it fits.
# --------------------------------------------------------------------------
def _aggregate_kernel(a_ref, xw_ref, b_ref, o_ref, *scratch,
                      apply_relu, tk, xw_resident):
    acc_ref = scratch[0] if scratch else o_ref
    k = pl.program_id(1)

    @pl.when(k == 0)
    def _():
        acc_ref[...] = jnp.zeros(acc_ref.shape, dtype=acc_ref.dtype)

    if xw_resident:
        start = pl.multiple_of(k * tk, _LANE)
        xw_blk = xw_ref[pl.ds(start, tk), :]
    else:
        xw_blk = xw_ref[...]

    acc_ref[...] += jnp.dot(a_ref[...], xw_blk,
                            preferred_element_type=jnp.float32)

    @pl.when(k == pl.num_programs(1) - 1)
    def _():
        out = acc_ref[...] + b_ref[...]
        if apply_relu:
            out = jnp.maximum(out, 0.0)
        o_ref[...] = out.astype(o_ref.dtype)


def _aggregate(a, xw, bias, *, apply_relu, out_dtype, tm, tk):
    n = a.shape[0]
    f = xw.shape[1]
    out_bytes = jnp.dtype(out_dtype).itemsize
    use_scratch = out_dtype != jnp.float32

    # Can XW stay resident in VMEM for the whole kernel?
    est = (2 * tm * tk * 2          # A double-buffer (bf16)
           + 2 * n * f * 2          # resident XW (counted double-buffered)
           + 2 * f * 4              # bias
           + 2 * tm * f * out_bytes  # output block
           + (tm * f * 4 if use_scratch else 0))
    xw_resident = est <= _VMEM_BUDGET

    kernel = functools.partial(_aggregate_kernel, apply_relu=apply_relu,
                               tk=tk, xw_resident=xw_resident)

    if xw_resident:
        xw_spec = pl.BlockSpec((n, f), lambda i, k: (0, 0))
        xw_bytes = n * f * 2
    else:
        xw_spec = pl.BlockSpec((tk, f), lambda i, k: (k, 0))
        xw_bytes = n * f * 2 * (n // tm)

    cost = pl.CostEstimate(
        flops=2 * n * n * f,
        transcendentals=0,
        bytes_accessed=int(a.size * 2 + xw_bytes + f * 4 + n * f * out_bytes),
    )

    scratch_shapes = [pltpu.VMEM((tm, f), jnp.float32)] if use_scratch else []

    return pl.pallas_call(
        kernel,
        out_shape=jax.ShapeDtypeStruct((n, f), out_dtype),
        grid=(n // tm, n // tk),
        in_specs=[
            pl.BlockSpec((tm, tk), lambda i, k: (i, k)),   # A_hat tile
            xw_spec,                                       # XW (resident/stream)
            pl.BlockSpec((1, f), lambda i, k: (0, 0)),     # bias (resident)
        ],
        out_specs=pl.BlockSpec((tm, f), lambda i, k: (i, 0)),
        scratch_shapes=scratch_shapes,
        compiler_params=pltpu.CompilerParams(
            dimension_semantics=("parallel", "arbitrary"),
            vmem_limit_bytes=_VMEM_LIMIT,
        ),
        cost_estimate=cost,
    )(a, xw, bias)


# --------------------------------------------------------------------------
# Full encoder forward.  `a_p` must be the padded bf16 A_hat produced once by
# prepare_adjacency (constant across calls); x / params are unpadded f32.
# --------------------------------------------------------------------------
def variational_gcn_encoder(a_p, x, params):
    n, in_dim = x.shape
    n_pad = a_p.shape[0]
    z_dim = params["w_mu"].shape[1]

    # Fuse the mu / logstd heads into one lane-dense weight / bias slab.
    w_cat = jnp.concatenate([params["w_mu"], params["w_logstd"]], axis=1)
    b_cat = jnp.concatenate([params["b_mu"], params["b_logstd"]], axis=1)

    in_pad = _round_up(in_dim, _LANE)
    h_pad = _round_up(params["w_h"].shape[1], _LANE)
    zc_pad = _round_up(2 * z_dim, _LANE)

    x_p = _pad2(x, n_pad, in_pad).astype(jnp.bfloat16)
    wh_p = _pad2(params["w_h"], in_pad, h_pad).astype(jnp.bfloat16)
    bh_p = _pad2(params["b_h"], 1, h_pad).astype(jnp.float32)
    wc_p = _pad2(w_cat, h_pad, zc_pad).astype(jnp.bfloat16)
    bc_p = _pad2(b_cat, 1, zc_pad).astype(jnp.float32)

    tm, tk = _agg_tiles(n_pad)

    # Layer 1: H = relu(A_hat @ (X @ W_h) + b_h)   (H kept bf16 for the MXU)
    xw = _feature_matmul(x_p, wh_p)
    h = _aggregate(a_p, xw, bh_p, apply_relu=True,
                   out_dtype=jnp.bfloat16, tm=tm, tk=tk)

    # Layer 2 (fused heads): [mu | logstd] = A_hat @ (H @ W_cat) + b_cat
    hw = _feature_matmul(h, wc_p)
    out = _aggregate(a_p, hw, bc_p, apply_relu=False,
                     out_dtype=jnp.float32, tm=tm, tk=tk)

    mu = out[:n, :z_dim]
    logstd = out[:n, z_dim:2 * z_dim]
    return mu, logstd


# --------------------------------------------------------------------------
# Plain-JAX glue: edge_index -> dense D^{-1/2}(A+I)D^{-1/2}, matching PyG's
# gcn_norm (scatter-add for duplicate edges, add_remaining_self_loops).
# --------------------------------------------------------------------------
def gcn_norm_dense(edge_index, num_nodes):
    src, dst = edge_index[0], edge_index[1]
    a = jnp.zeros((num_nodes, num_nodes), jnp.float32)
    a = a.at[dst, src].add(1.0)                          # duplicates accumulate
    diag = jnp.diagonal(a)
    a = a + jnp.diag(jnp.where(diag == 0.0, 1.0, 0.0))   # only missing self-loops
    deg = a.sum(axis=1)
    d_inv_sqrt = jnp.where(deg > 0.0, 1.0 / jnp.sqrt(deg), 0.0)
    return d_inv_sqrt[:, None] * a * d_inv_sqrt[None, :]


def prepare_adjacency(a_hat, n_pad):
    """Pad + cast A_hat to bf16 ONCE (constant across forward calls)."""
    return _pad2(a_hat, n_pad, n_pad).astype(jnp.bfloat16)


def init_params(key, in_channels, h_dim, z_dim):
    def glorot(k, shape):
        lim = jnp.sqrt(6.0 / (shape[0] + shape[1]))
        return jax.random.uniform(k, shape, jnp.float32, -lim, lim)

    k_h, k_mu, k_ls = jax.random.split(key, 3)
    return dict(
        w_h=glorot(k_h, (in_channels, h_dim)),
        b_h=jnp.zeros((1, h_dim), jnp.float32),
        w_mu=glorot(k_mu, (h_dim, z_dim)),
        b_mu=jnp.zeros((1, z_dim), jnp.float32),
        w_logstd=glorot(k_ls, (h_dim, z_dim)),
        b_logstd=jnp.zeros((1, z_dim), jnp.float32),
    )


if __name__ == "__main__":
    key = jax.random.PRNGKey(0)
    num_nodes, in_channels, h_dim, z_dim = 16, 8, 32, 16
    num_edges = 40

    k_x, k_src, k_dst, k_params = jax.random.split(key, 4)
    x = jax.random.normal(k_x, (num_nodes, in_channels), jnp.float32)
    src = jax.random.randint(k_src, (num_edges,), 0, num_nodes)
    dst = jax.random.randint(k_dst, (num_edges,), 0, num_nodes)
    edge_index = jnp.stack([src, dst])                    # (2, E) like PyG

    a_hat = gcn_norm_dense(edge_index, num_nodes)
    params = init_params(k_params, in_channels, h_dim, z_dim)

    # Constant across calls: pad + cast the dense normalized adjacency once.
    n_pad = _round_up(num_nodes, _LANE)
    a_p = jax.block_until_ready(prepare_adjacency(a_hat, n_pad))

    fwd = jax.jit(variational_gcn_encoder)
    mu, logstd = fwd(a_p, x, params)
    jax.block_until_ready((mu, logstd))

    # Plain-JAX f32 reference for parity (bf16 MXU inputs, f32 accumulate).
    def ref_forward(a, xv, p):
        h = jnp.maximum(a @ (xv @ p["w_h"]) + p["b_h"], 0.0)
        mu_r = a @ (h @ p["w_mu"]) + p["b_mu"]
        ls_r = a @ (h @ p["w_logstd"]) + p["b_logstd"]
        return mu_r, ls_r

    mu_ref, ls_ref = ref_forward(a_hat, x, params)

    assert mu.shape == (num_nodes, z_dim) and logstd.shape == (num_nodes, z_dim)
    assert bool(jnp.all(jnp.isfinite(mu))) and bool(jnp.all(jnp.isfinite(logstd)))
    assert float(jnp.max(jnp.abs(mu - mu_ref))) < 5e-2
    assert float(jnp.max(jnp.abs(logstd - ls_ref))) < 5e-2
    print("KERNEL_OK")
</pallas_src>

<mosaic_0001>
module attributes {stable_mosaic.version = 11 : i64} {
  func.func @_feature_matmul_kernel(%arg0: i32, %arg1: memref<128x128xbf16, #tpu.memory_space<vmem>>, %arg2: memref<128x128xbf16, #tpu.memory_space<vmem>>, %arg3: memref<128x128xbf16, #tpu.memory_space<vmem>>) attributes {dimension_semantics = [#tpu.dimension_semantics<parallel>], iteration_bounds = array<i64: 1>, scalar_prefetch = 0 : i64, scratch_operands = 0 : i64, tpu.core_type = #tpu.core_type<tc>, window_params = [{transform_indices = @transform_0, window_bounds = array<i64: 128, 128>}, {pipeline_mode = #tpu.pipeline_mode<synchronous>, transform_indices = @transform_1, window_bounds = array<i64: 128, 128>}, {transform_indices = @transform_2, window_bounds = array<i64: 128, 128>}]} {
    %c0 = arith.constant 0 : index
    %c0_0 = arith.constant 0 : index
    %0 = vector.load %arg1[%c0, %c0_0] : memref<128x128xbf16, #tpu.memory_space<vmem>>, vector<128x128xbf16>
    %c0_1 = arith.constant 0 : index
    %c0_2 = arith.constant 0 : index
    %1 = vector.load %arg2[%c0_1, %c0_2] : memref<128x128xbf16, #tpu.memory_space<vmem>>, vector<128x128xbf16>
    %cst = arith.constant dense<0.000000e+00> : vector<128x128xf32>
    %2 = tpu.matmul %0, %1, %cst {dimension_numbers = #tpu.dot_dimension_numbers<[1], [0], [0], [1], [0, 0, 1, 1], [], []>} : vector<128x128xbf16>, vector<128x128xbf16>, vector<128x128xf32> -> vector<128x128xf32>
    %3 = arith.truncf %2 : vector<128x128xf32> to vector<128x128xbf16>
    %c0_3 = arith.constant 0 : index
    %c0_4 = arith.constant 0 : index
    %4 = vector.load %arg3[%c0_3, %c0_4] : memref<128x128xbf16, #tpu.memory_space<vmem>>, vector<128x128xbf16>
    tpu.vector_store %arg3[%c0_3, %c0_4], %3 {strides = array<i32>} : memref<128x128xbf16, #tpu.memory_space<vmem>>, vector<128x128xbf16>,
    return
  }
  func.func @transform_0(%arg0: i32) -> (i32, i32) {
    %c0_i32 = arith.constant 0 : i32
    %c0_i32_0 = arith.constant 0 : i32
    return %arg0, %c0_i32 : i32, i32
  }
  func.func @transform_1(%arg0: i32) -> (i32, i32) {
    %c0_i32 = arith.constant 0 : i32
    %c0_i32_0 = arith.constant 0 : i32
    %c0_i32_1 = arith.constant 0 : i32
    return %c0_i32, %c0_i32_0 : i32, i32
  }
  func.func @transform_2(%arg0: i32) -> (i32, i32) {
    %c0_i32 = arith.constant 0 : i32
    %c0_i32_0 = arith.constant 0 : i32
    return %arg0, %c0_i32 : i32, i32
  }
}

module attributes {stable_mosaic.version = 11 : i64} {
  func.func @_aggregate_kernel(%arg0: i32, %arg1: i32, %arg2: memref<64x128xbf16, #tpu.memory_space<vmem>>, %arg3: memref<128x128xbf16, #tpu.memory_space<vmem>>, %arg4: memref<1x128xf32, #tpu.memory_space<vmem>>, %arg5: memref<64x128xbf16, #tpu.memory_space<vmem>>, %arg6: memref<64x128xf32, #tpu.memory_space<vmem>>) attributes {dimension_semantics = [#tpu.dimension_semantics<parallel>, #tpu.dimension_semantics<arbitrary>], iteration_bounds = array<i64: 2, 1>, scalar_prefetch = 0 : i64, scratch_operands = 1 : i64, tpu.core_type = #tpu.core_type<tc>, window_params = [{transform_indices = @transform_0, window_bounds = array<i64: 64, 128>}, {pipeline_mode = #tpu.pipeline_mode<synchronous>, transform_indices = @transform_1, window_bounds = array<i64: 128, 128>}, {pipeline_mode = #tpu.pipeline_mode<synchronous>, transform_indices = @transform_2, window_bounds = array<i64: 1, 128>}, {transform_indices = @transform_3, window_bounds = array<i64: 64, 128>}]} {
    %c0_i32 = arith.constant 0 : i32
    %0 = arith.cmpi eq, %arg1, %c0_i32 : i32
    %1 = arith.extui %0 : i1 to i32
    %c0_i32_0 = arith.constant 0 : i32
    %2 = arith.cmpi ne, %1, %c0_i32_0 : i32
    scf.if %2 {
      %cst_9 = arith.constant 0.000000e+00 : f32
      %15 = vector.broadcast %cst_9 : f32 to vector<64x128xf32>
      %c0_10 = arith.constant 0 : index
      %c0_11 = arith.constant 0 : index
      %16 = vector.load %arg6[%c0_10, %c0_11] : memref<64x128xf32, #tpu.memory_space<vmem>>, vector<64x128xf32>
      tpu.vector_store %arg6[%c0_10, %c0_11], %15 {strides = array<i32>} : memref<64x128xf32, #tpu.memory_space<vmem>>, vector<64x128xf32>,
    } else {
    }
    %c128_i32 = arith.constant 128 : i32
    %3 = arith.muli %arg1, %c128_i32 : i32
    %4 = tpu.assume_multiple %3, 128 : i32
    %5 = arith.index_cast %4 : i32 to index
    %c0 = arith.constant 0 : index
    %6 = vector.load %arg3[%5, %c0] : memref<128x128xbf16, #tpu.memory_space<vmem>>, vector<128x128xbf16>
    %c0_1 = arith.constant 0 : index
    %c0_2 = arith.constant 0 : index
    %7 = vector.load %arg6[%c0_1, %c0_2] : memref<64x128xf32, #tpu.memory_space<vmem>>, vector<64x128xf32>
    %c0_3 = arith.constant 0 : index
    %c0_4 = arith.constant 0 : index
    %8 = vector.load %arg2[%c0_3, %c0_4] : memref<64x128xbf16, #tpu.memory_space<vmem>>, vector<64x128xbf16>
    %cst = arith.constant dense<0.000000e+00> : vector<64x128xf32>
    %9 = tpu.matmul %8, %6, %cst {dimension_numbers = #tpu.dot_dimension_numbers<[1], [0], [0], [1], [0, 0, 1, 1], [], []>} : vector<64x128xbf16>, vector<128x128xbf16>, vector<64x128xf32> -> vector<64x128xf32>
    %10 = arith.addf %7, %9 : vector<64x128xf32>
    %c0_5 = arith.constant 0 : index
    %c0_6 = arith.constant 0 : index
    %11 = vector.load %arg6[%c0_5, %c0_6] : memref<64x128xf32, #tpu.memory_space<vmem>>, vector<64x128xf32>
    tpu.vector_store %arg6[%c0_5, %c0_6], %10 {strides = array<i32>} : memref<64x128xf32, #tpu.memory_space<vmem>>, vector<64x128xf32>,
    %c0_i32_7 = arith.constant 0 : i32
    %12 = arith.cmpi eq, %arg1, %c0_i32_7 : i32
    %13 = arith.extui %12 : i1 to i32
    %c0_i32_8 = arith.constant 0 : i32
    %14 = arith.cmpi ne, %13, %c0_i32_8 : i32
    scf.if %14 {
      %c0_9 = arith.constant 0 : index
      %c0_10 = arith.constant 0 : index
      %15 = vector.load %arg6[%c0_9, %c0_10] : memref<64x128xf32, #tpu.memory_space<vmem>>, vector<64x128xf32>
      %c0_11 = arith.constant 0 : index
      %c0_12 = arith.constant 0 : index
      %16 = vector.load %arg4[%c0_11, %c0_12] : memref<1x128xf32, #tpu.memory_space<vmem>>, vector<1x128xf32>
      %17 = vector.broadcast %16 : vector<1x128xf32> to vector<64x128xf32>
      %18 = arith.addf %15, %17 : vector<64x128xf32>
      %cst_13 = arith.constant 0.000000e+00 : f32
      %19 = vector.broadcast %cst_13 : f32 to vector<64x128xf32>
      %20 = arith.maximumf %18, %19 : vector<64x128xf32>
      %21 = arith.truncf %20 : vector<64x128xf32> to vector<64x128xbf16>
      %c0_14 = arith.constant 0 : index
      %c0_15 = arith.constant 0 : index
      %22 = vector.load %arg5[%c0_14, %c0_15] : memref<64x128xbf16, #tpu.memory_space<vmem>>, vector<64x128xbf16>
      tpu.vector_store %arg5[%c0_14, %c0_15], %21 {strides = array<i32>} : memref<64x128xbf16, #tpu.memory_space<vmem>>, vector<64x128xbf16>,
    } else {
    }
    return
  }
  func.func @transform_0(%arg0: i32, %arg1: i32) -> (i32, i32) {
    %c0_i32 = arith.constant 0 : i32
    return %arg0, %arg1 : i32, i32
  }
  func.func @transform_1(%arg0: i32, %arg1: i32) -> (i32, i32) {
    %c0_i32 = arith.constant 0 : i32
    %c0_i32_0 = arith.constant 0 : i32
    %c0_i32_1 = arith.constant 0 : i32
    return %c0_i32, %c0_i32_0 : i32, i32
  }
  func.func @transform_2(%arg0: i32, %arg1: i32) -> (i32, i32) {
    %c0_i32 = arith.constant 0 : i32
    %c0_i32_0 = arith.constant 0 : i32
    %c0_i32_1 = arith.constant 0 : i32
    return %c0_i32, %c0_i32_0 : i32, i32
  }
  func.func @transform_3(%arg0: i32, %arg1: i32) -> (i32, i32) {
    %c0_i32 = arith.constant 0 : i32
    %c0_i32_0 = arith.constant 0 : i32
    return %arg0, %c0_i32 : i32, i32
  }
}

module attributes {stable_mosaic.version = 11 : i64} {
  func.func @_aggregate_kernel(%arg0: i32, %arg1: i32, %arg2: memref<64x128xbf16, #tpu.memory_space<vmem>>, %arg3: memref<128x128xbf16, #tpu.memory_space<vmem>>, %arg4: memref<1x128xf32, #tpu.memory_space<vmem>>, %arg5: memref<64x128xf32, #tpu.memory_space<vmem>>) attributes {dimension_semantics = [#tpu.dimension_semantics<parallel>, #tpu.dimension_semantics<arbitrary>], iteration_bounds = array<i64: 2, 1>, scalar_prefetch = 0 : i64, scratch_operands = 0 : i64, tpu.core_type = #tpu.core_type<tc>, window_params = [{transform_indices = @transform_0, window_bounds = array<i64: 64, 128>}, {pipeline_mode = #tpu.pipeline_mode<synchronous>, transform_indices = @transform_1, window_bounds = array<i64: 128, 128>}, {pipeline_mode = #tpu.pipeline_mode<synchronous>, transform_indices = @transform_2, window_bounds = array<i64: 1, 128>}, {transform_indices = @transform_3, window_bounds = array<i64: 64, 128>}]} {
    %c0_i32 = arith.constant 0 : i32
    %0 = arith.cmpi eq, %arg1, %c0_i32 : i32
    %1 = arith.extui %0 : i1 to i32
    %c0_i32_0 = arith.constant 0 : i32
    %2 = arith.cmpi ne, %1, %c0_i32_0 : i32
    scf.if %2 {
      %cst_9 = arith.constant 0.000000e+00 : f32
      %15 = vector.broadcast %cst_9 : f32 to vector<64x128xf32>
      %c0_10 = arith.constant 0 : index
      %c0_11 = arith.constant 0 : index
      %16 = vector.load %arg5[%c0_10, %c0_11] : memref<64x128xf32, #tpu.memory_space<vmem>>, vector<64x128xf32>
      tpu.vector_store %arg5[%c0_10, %c0_11], %15 {strides = array<i32>} : memref<64x128xf32, #tpu.memory_space<vmem>>, vector<64x128xf32>,
    } else {
    }
    %c128_i32 = arith.constant 128 : i32
    %3 = arith.muli %arg1, %c128_i32 : i32
    %4 = tpu.assume_multiple %3, 128 : i32
    %5 = arith.index_cast %4 : i32 to index
    %c0 = arith.constant 0 : index
    %6 = vector.load %arg3[%5, %c0] : memref<128x128xbf16, #tpu.memory_space<vmem>>, vector<128x128xbf16>
    %c0_1 = arith.constant 0 : index
    %c0_2 = arith.constant 0 : index
    %7 = vector.load %arg5[%c0_1, %c0_2] : memref<64x128xf32, #tpu.memory_space<vmem>>, vector<64x128xf32>
    %c0_3 = arith.constant 0 : index
    %c0_4 = arith.constant 0 : index
    %8 = vector.load %arg2[%c0_3, %c0_4] : memref<64x128xbf16, #tpu.memory_space<vmem>>, vector<64x128xbf16>
    %cst = arith.constant dense<0.000000e+00> : vector<64x128xf32>
    %9 = tpu.matmul %8, %6, %cst {dimension_numbers = #tpu.dot_dimension_numbers<[1], [0], [0], [1], [0, 0, 1, 1], [], []>} : vector<64x128xbf16>, vector<128x128xbf16>, vector<64x128xf32> -> vector<64x128xf32>
    %10 = arith.addf %7, %9 : vector<64x128xf32>
    %c0_5 = arith.constant 0 : index
    %c0_6 = arith.constant 0 : index
    %11 = vector.load %arg5[%c0_5, %c0_6] : memref<64x128xf32, #tpu.memory_space<vmem>>, vector<64x128xf32>
    tpu.vector_store %arg5[%c0_5, %c0_6], %10 {strides = array<i32>} : memref<64x128xf32, #tpu.memory_space<vmem>>, vector<64x128xf32>,
    %c0_i32_7 = arith.constant 0 : i32
    %12 = arith.cmpi eq, %arg1, %c0_i32_7 : i32
    %13 = arith.extui %12 : i1 to i32
    %c0_i32_8 = arith.constant 0 : i32
    %14 = arith.cmpi ne, %13, %c0_i32_8 : i32
    scf.if %14 {
      %c0_9 = arith.constant 0 : index
      %c0_10 = arith.constant 0 : index
      %15 = vector.load %arg5[%c0_9, %c0_10] : memref<64x128xf32, #tpu.memory_space<vmem>>, vector<64x128xf32>
      %c0_11 = arith.constant 0 : index
      %c0_12 = arith.constant 0 : index
      %16 = vector.load %arg4[%c0_11, %c0_12] : memref<1x128xf32, #tpu.memory_space<vmem>>, vector<1x128xf32>
      %17 = vector.broadcast %16 : vector<1x128xf32> to vector<64x128xf32>
      %18 = arith.addf %15, %17 : vector<64x128xf32>
      %c0_13 = arith.constant 0 : index
      %c0_14 = arith.constant 0 : index
      %19 = vector.load %arg5[%c0_13, %c0_14] : memref<64x128xf32, #tpu.memory_space<vmem>>, vector<64x128xf32>
      tpu.vector_store %arg5[%c0_13, %c0_14], %18 {strides = array<i32>} : memref<64x128xf32, #tpu.memory_space<vmem>>, vector<64x128xf32>,
    } else {
    }
    return
  }
  func.func @transform_0(%arg0: i32, %arg1: i32) -> (i32, i32) {
    %c0_i32 = arith.constant 0 : i32
    return %arg0, %arg1 : i32, i32
  }
  func.func @transform_1(%arg0: i32, %arg1: i32) -> (i32, i32) {
    %c0_i32 = arith.constant 0 : i32
    %c0_i32_0 = arith.constant 0 : i32
    %c0_i32_1 = arith.constant 0 : i32
    return %c0_i32, %c0_i32_0 : i32, i32
  }
  func.func @transform_2(%arg0: i32, %arg1: i32) -> (i32, i32) {
    %c0_i32 = arith.constant 0 : i32
    %c0_i32_0 = arith.constant 0 : i32
    %c0_i32_1 = arith.constant 0 : i32
    return %c0_i32, %c0_i32_0 : i32, i32
  }
  func.func @transform_3(%arg0: i32, %arg1: i32) -> (i32, i32) {
    %c0_i32 = arith.constant 0 : i32
    %c0_i32_0 = arith.constant 0 : i32
    return %arg0, %c0_i32 : i32, i32
  }
}

</mosaic_0001>

<bundles_post_ra>
// kernel: variational_gcn_encoder.4
= control target key start
LH: loop header
LB: loop body
LE: loop exit
PB: predicated region body
PF: predicated region fallthrough
CT: control target
= control target key end

     0   :  { %s462_s1 = inlined_call_operand.vmem [shape: bf16[128,128], index: 1, kind: input, shape index: {}]   ;;  %s463_s0 = inlined_call_operand.vmem [shape: bf16[128,128], index: 0, kind: input, shape index: {}]   ;;  %s464_s2 = inlined_call_operand.vmem [shape: bf16[128,128], index: 2, kind: output, shape index: {}]  }
   0x1   :  { %v303_v0 = vld [vmem:[%s462_s1 + $0x38] sm:$0xff]  ;;  %v302_v1 = vld [vmem:[%s462_s1 + $0x30] sm:$0xff]  ;;  %v301_v2 = vld [vmem:[%s462_s1 + $0x28] sm:$0xff] }
   0x2   :  { %139 = vmatpush.bf16.msra.mxu0 %v303_v0  ;;  %351 = vmatpush.bf16.msra.mxu1 %v303_v0  ;;  %v300_v3 = vld [vmem:[%s462_s1 + $0x20] sm:$0xff]  ;;  %v299_v4 = vld [vmem:[%s462_s1 + $0x18] sm:$0xff]  ;;  %v298_v5 = vld [vmem:[%s462_s1 + $0x10] sm:$0xff] }
   0x3   :  { %352 = vmatpush.bf16.msra.mxu2 %v303_v0  ;;  %353 = vmatpush.bf16.msra.mxu3 %v303_v0  ;;  %v297_v6 = vld [vmem:[%s462_s1 + $0x8] sm:$0xff]  ;;  %v296_v7 = vld [vmem:[%s462_s1] sm:$0xff]  ;;  %v290_v9 = vld [vmem:[%s463_s0 + $0x10] sm:$0xff] }
   0x4   :  { %v288_v8 = vld [vmem:[%s463_s0] sm:$0xff]  ;;  %v294_v11 = vld [vmem:[%s463_s0 + $0x30] sm:$0xff]  ;;  %v289_v12 = vld [vmem:[%s463_s0 + $0x8] sm:$0xff] }
   0x5   :  { %v292_v10 = vld [vmem:[%s463_s0 + $0x20] sm:$0xff]  ;;  %v291_v13 = vld [vmem:[%s463_s0 + $0x18] sm:$0xff]  ;;  %v293_v14 = vld [vmem:[%s463_s0 + $0x28] sm:$0xff] }
   0x6   :  { %140 = vmatpush.bf16.msra.mxu0 %v302_v1  ;;  %354 = vmatpush.bf16.msra.mxu1 %v302_v1  ;;  %v295_v15 = vld [vmem:[%s463_s0 + $0x38] sm:$0xff] }
   0x7   :  { %355 = vmatpush.bf16.msra.mxu2 %v302_v1  ;;  %356 = vmatpush.bf16.msra.mxu3 %v302_v1 }
   0xa   :  { %141 = vmatpush.bf16.msra.mxu0 %v301_v2  ;;  %357 = vmatpush.bf16.msra.mxu1 %v301_v2 }
   0xb   :  { %358 = vmatpush.bf16.msra.mxu2 %v301_v2  ;;  %359 = vmatpush.bf16.msra.mxu3 %v301_v2 }
   0xe   :  { %142 = vmatpush.bf16.msra.mxu0 %v300_v3  ;;  %360 = vmatpush.bf16.msra.mxu1 %v300_v3 }
   0xf   :  { %361 = vmatpush.bf16.msra.mxu2 %v300_v3  ;;  %362 = vmatpush.bf16.msra.mxu3 %v300_v3 }
  0x12   :  { %143 = vmatpush.bf16.msra.mxu0 %v299_v4  ;;  %363 = vmatpush.bf16.msra.mxu1 %v299_v4 }
  0x13   :  { %364 = vmatpush.bf16.msra.mxu2 %v299_v4  ;;  %365 = vmatpush.bf16.msra.mxu3 %v299_v4 }
  0x16   :  { %144 = vmatpush.bf16.msra.mxu0 %v298_v5  ;;  %366 = vmatpush.bf16.msra.mxu1 %v298_v5 }
  0x17   :  { %367 = vmatpush.bf16.msra.mxu2 %v298_v5  ;;  %368 = vmatpush.bf16.msra.mxu3 %v298_v5 }
  0x1a   :  { %145 = vmatpush.bf16.msra.mxu0 %v297_v6  ;;  %369 = vmatpush.bf16.msra.mxu1 %v297_v6 }
  0x1b   :  { %370 = vmatpush.bf16.msra.mxu2 %v297_v6  ;;  %371 = vmatpush.bf16.msra.mxu3 %v297_v6 }
  0x1e   :  { %146 = vmatpush.bf16.msra.mxu0 %v296_v7  ;;  %372 = vmatpush.bf16.msra.mxu1 %v296_v7 }
  0x1f   :  { %373 = vmatpush.bf16.msra.mxu2 %v296_v7  ;;  %374 = vmatpush.bf16.msra.mxu3 %v296_v7 }
  0x21   :  { %147 = vmatmul.bf16.vlgmr.msra.gmra.mxu0 %v288_v8  ;;  %157 = vmatmul.bf16.vlgmr.msra.gmra.mxu1 %v290_v9 }
  0x22   :  { %167 = vmatmul.bf16.vlgmr.msra.gmra.mxu2 %v292_v10  ;;  %177 = vmatmul.bf16.vlgmr.msra.gmra.mxu3 %v294_v11 }
  0x31   :  { %152 = vmatmul.bf16.gmra.mxu0 %v289_v12  ;;  %162 = vmatmul.bf16.gmra.mxu1 %v291_v13 }
  0x32   :  { %172 = vmatmul.bf16.gmra.mxu2 %v293_v14  ;;  %182 = vmatmul.bf16.gmra.mxu3 %v295_v15 }
  0x9e   :  { %v148_v16 = vpop.f32.mrf.mxu0  ;;  %v158_v17 = vpop.f32.mrf.mxu1 }
  0xa5   :  { %v168_v18 = vpop.f32.mrf.mxu2  ;;  %v178_v19 = vpop.f32.mrf.mxu3 }
  0xa6   :  { %v150_v20 = vpop.f32.mrf.mxu0  ;;  %v160_v21 = vpop.f32.mrf.mxu1 }
  0xa7   :  { %v307_v22 = vpack.c.bf16 %v150_v20, %v148_v16  ;;  %v317_v23 = vpack.c.bf16 %v160_v21, %v158_v17 }
  0xa9   :  { %308 = vst [vmem:[%s464_s2] sm:$0xff] %v307_v22  }
  0xaa   :  { %345 = vst [vmem:[%s464_s2 + $0x10] sm:$0xff] %v317_v23  }
  0xad   :  { %v170_v24 = vpop.f32.mrf.mxu2  ;;  %v180_v25 = vpop.f32.mrf.mxu3 }
  0xae   :  { %v327_v26 = vpack.c.bf16 %v170_v24, %v168_v18  ;;  %v337_v27 = vpack.c.bf16 %v180_v25, %v178_v19  ;;  %v153_v28 = vpop.f32.mrf.mxu0  ;;  %v163_v29 = vpop.f32.mrf.mxu1 }
  0xb0   :  { %347 = vst [vmem:[%s464_s2 + $0x20] sm:$0xff] %v327_v26  }
  0xb1   :  { %349 = vst [vmem:[%s464_s2 + $0x30] sm:$0xff] %v337_v27  }
  0xb5   :  { %v173_v30 = vpop.f32.mrf.mxu2  ;;  %v183_v31 = vpop.f32.mrf.mxu3 }
  0xb6   :  { %v155_v32 = vpop.f32.mrf.mxu0  ;;  %v165_v33 = vpop.f32.mrf.mxu1 }
  0xb7   :  { %v312_v34 = vpack.c.bf16 %v155_v32, %v153_v28  ;;  %v322_v35 = vpack.c.bf16 %v165_v33, %v163_v29 }
  0xb9   :  { %344 = vst [vmem:[%s464_s2 + $0x8] sm:$0xff] %v312_v34  }
  0xba   :  { %346 = vst [vmem:[%s464_s2 + $0x18] sm:$0xff] %v322_v35  }
  0xbd   :  { %v175_v36 = vpop.f32.mrf.mxu2  ;;  %v185_v37 = vpop.f32.mrf.mxu3 }
  0xbe   :  { %v332_v38 = vpack.c.bf16 %v175_v36, %v173_v30  ;;  %v342_v39 = vpack.c.bf16 %v185_v37, %v183_v31 }
  0xc0   :  { %348 = vst [vmem:[%s464_s2 + $0x28] sm:$0xff] %v332_v38  }
  0xc1   :  { %350 = vst [vmem:[%s464_s2 + $0x38] sm:$0xff] %v342_v39  }

// kernel: variational_gcn_encoder.5
= control target key start
LH: loop header
LB: loop body
LE: loop exit
PB: predicated region body
PF: predicated region fallthrough
CT: control target
= control target key end

     0   :  { %s667_s12 = smov 0   ;;  %s669_s13 = smov 0   ;;  %s737_s0 = inlined_call_operand.vmem [shape: bf16[128,128], index: 0, kind: input, shape index: {}]   ;;  %s738_s1 = inlined_call_operand.vmem [shape: bf16[128,128], index: 1, kind: input, shape index: {}]   ;;  %s739_s2 = inlined_call_operand.vmem [shape: f32[1,128], index: 2, kind: input, shape index: {}]   ;;  %s740_s3 = inlined_call_operand.vmem [shape: bf16[128,128], index: 3, kind: output, shape index: {}]  }
   0x1   :  { %s671_s14 = smov 0  }
   0x2 LB: > { %s25_s15 = sadd.s32 1, %s641_s13  ;;  %p484_p0 = scmp.ge.s32.totalorder %s645_s14, 1  ;;  %s645_s14 = sphi %s671_s14, %s13_s14   ;;  %s641_s13 = sphi %s669_s13, %s742_s13   ;;  %s637_s12 = sphi %s667_s12, %s741_s12  }
   0x3   : > { %p27_p1 = scmp.ge.s32.totalorder %s25_s15, 2  ;;  %p155_p2 = scmp.lt.s32.totalorder %s645_s14, 3 }
   0x5   : > { %s744_s15 = smov (%p27_p1, %s25_s15), 0  ;;  %p156_p3 = pnand %p484_p0, %p155_p2 }
   0x6   : > { %s485_s24 = sshll.u32 (!%p156_p3), %s637_s12, 3 }
   0x7   : > { %159 = sbr.rel (%p156_p3) target bundleno = 193 (0xc1), region = 32  ;;  %p183_p4 = scmp.lt.s32.totalorder (!%p156_p3), %s485_s24, 15 }
   0xc   : > { %v546_v0 = vld [vmem:[%s738_s1 + $0x38] sm:$0xff]  ;;  %v545_v1 = vld [vmem:[%s738_s1 + $0x30] sm:$0xff]  ;;  %v544_v2 = vld [vmem:[%s738_s1 + $0x28] sm:$0xff]  ;;  %s746_s24 = smov (!%p183_p4, %s485_s24), 15 }
   0xd   : > { %318 = vmatpush.bf16.msra.mxu0 %v546_v0  ;;  %574 = vmatpush.bf16.msra.mxu1 %v546_v0  ;;  %v543_v3 = vld [vmem:[%s738_s1 + $0x20] sm:$0xff]  ;;  %v542_v4 = vld [vmem:[%s738_s1 + $0x18] sm:$0xff]  ;;  %v541_v5 = vld [vmem:[%s738_s1 + $0x10] sm:$0xff]  ;;  %s486_s4 = sshll.u32 %s746_s24, 2 }
   0xe   : > { %575 = vmatpush.bf16.msra.mxu2 %v546_v0  ;;  %576 = vmatpush.bf16.msra.mxu3 %v546_v0  ;;  %v540_v6 = vld [vmem:[%s738_s1 + $0x8] sm:$0xff]  ;;  %v539_v7 = vld [vmem:[%s738_s1] sm:$0xff]  ;;  %s189_s9 = scalar_lea.vmem %s737_s0, %s486_s4  ;;  %s195_s17 = scalar_lea.vmem %s740_s3, %s486_s4 }
   0xf   : > { %v547_v8 = vld [vmem:[%s189_s9] sm:$0xff]  ;;  %v548_v9 = vld [vmem:[%s189_s9 + $0x8] sm:$0xff]  ;;  %v549_v10 = vld [vmem:[%s189_s9 + $0x10] sm:$0xff] }
  0x10   : > { %v550_v11 = vld [vmem:[%s189_s9 + $0x18] sm:$0xff]  ;;  %v622_v14 = vld [vmem:[%s739_s2] ss:$0 sm:$0xff] }
  0x11   : > { %319 = vmatpush.bf16.msra.mxu0 %v545_v1  ;;  %577 = vmatpush.bf16.msra.mxu1 %v545_v1 }
  0x12   : > { %578 = vmatpush.bf16.msra.mxu2 %v545_v1  ;;  %579 = vmatpush.bf16.msra.mxu3 %v545_v1 }
  0x15   : > { %320 = vmatpush.bf16.msra.mxu0 %v544_v2  ;;  %580 = vmatpush.bf16.msra.mxu1 %v544_v2 }
  0x16   : > { %581 = vmatpush.bf16.msra.mxu2 %v544_v2  ;;  %582 = vmatpush.bf16.msra.mxu3 %v544_v2 }
  0x19   : > { %321 = vmatpush.bf16.msra.mxu0 %v543_v3  ;;  %583 = vmatpush.bf16.msra.mxu1 %v543_v3 }
  0x1a   : > { %584 = vmatpush.bf16.msra.mxu2 %v543_v3  ;;  %585 = vmatpush.bf16.msra.mxu3 %v543_v3 }
  0x1d   : > { %322 = vmatpush.bf16.msra.mxu0 %v542_v4  ;;  %586 = vmatpush.bf16.msra.mxu1 %v542_v4 }
  0x1e   : > { %587 = vmatpush.bf16.msra.mxu2 %v542_v4  ;;  %588 = vmatpush.bf16.msra.mxu3 %v542_v4 }
  0x21   : > { %323 = vmatpush.bf16.msra.mxu0 %v541_v5  ;;  %589 = vmatpush.bf16.msra.mxu1 %v541_v5 }
  0x22   : > { %590 = vmatpush.bf16.msra.mxu2 %v541_v5  ;;  %591 = vmatpush.bf16.msra.mxu3 %v541_v5 }
  0x25   : > { %324 = vmatpush.bf16.msra.mxu0 %v540_v6  ;;  %592 = vmatpush.bf16.msra.mxu1 %v540_v6 }
  0x26   : > { %593 = vmatpush.bf16.msra.mxu2 %v540_v6  ;;  %594 = vmatpush.bf16.msra.mxu3 %v540_v6 }
  0x29   : > { %325 = vmatpush.bf16.msra.mxu0 %v539_v7  ;;  %595 = vmatpush.bf16.msra.mxu1 %v539_v7 }
  0x2a   : > { %596 = vmatpush.bf16.msra.mxu2 %v539_v7  ;;  %597 = vmatpush.bf16.msra.mxu3 %v539_v7 }
  0x2c   : > { %326 = vmatmul.bf16.vlgmr.msra.gmra.mxu0 %v547_v8  ;;  %331 = vmatmul.bf16.vlgmr.msra.gmra.mxu1 %v548_v9 }
  0x2d   : > { %336 = vmatmul.bf16.vlgmr.msra.gmra.mxu2 %v549_v10  ;;  %341 = vmatmul.bf16.vlgmr.msra.gmra.mxu3 %v550_v11 }
  0xa9   : > { %v327_v12 = vpop.f32.mrf.mxu0  ;;  %v332_v13 = vpop.f32.mrf.mxu1 }
  0xaa   : > { %v378_v15 = vadd.f32 %v622_v14, %v327_v12  ;;  %v380_v16 = vadd.f32 %v622_v14, %v332_v13 }
  0xac   : > { %v386_v23 = vmax.f32 %v378_v15, 0.0  ;;  %v388_v24 = vmax.f32 %v380_v16, 0.0 }
  0xb0   : > { %v337_v17 = vpop.f32.mrf.mxu2  ;;  %v342_v18 = vpop.f32.mrf.mxu3 }
  0xb1   : > { %v329_v19 = vpop.f32.mrf.mxu0  ;;  %v334_v20 = vpop.f32.mrf.mxu1  ;;  %v382_v29 = vadd.f32 %v622_v14, %v337_v17  ;;  %v384_v30 = vadd.f32 %v622_v14, %v342_v18 }
  0xb2   : > { %v379_v21 = vadd.f32 %v622_v14, %v329_v19  ;;  %v381_v22 = vadd.f32 %v622_v14, %v334_v20 }
  0xb3   : > { %v390_v35 = vmax.f32 %v382_v29, 0.0  ;;  %v392_v36 = vmax.f32 %v384_v30, 0.0 }
  0xb4   : > { %v387_v25 = vmax.f32 %v379_v21, 0.0  ;;  %v389_v26 = vmax.f32 %v381_v22, 0.0 }
  0xb6   : > { %v554_v27 = vpack.c.bf16 %v387_v25, %v386_v23  ;;  %v559_v28 = vpack.c.bf16 %v389_v26, %v388_v24 }
  0xb8   : > { %555 = vst [vmem:[%s195_s17] sm:$0xff] %v554_v27   ;;  %v339_v31 = vpop.f32.mrf.mxu2  ;;  %v344_v32 = vpop.f32.mrf.mxu3 }
  0xb9   : > { %571 = vst [vmem:[%s195_s17 + $0x8] sm:$0xff] %v559_v28   ;;  %v383_v33 = vadd.f32 %v622_v14, %v339_v31  ;;  %v385_v34 = vadd.f32 %v622_v14, %v344_v32 }
  0xbb   : > { %v391_v37 = vmax.f32 %v383_v33, 0.0  ;;  %v393_v38 = vmax.f32 %v385_v34, 0.0 }
  0xbd   : > { %v564_v39 = vpack.c.bf16 %v391_v37, %v390_v35  ;;  %v569_v40 = vpack.c.bf16 %v393_v38, %v392_v36 }
  0xbf   : > { %572 = vst [vmem:[%s195_s17 + $0x10] sm:$0xff] %v564_v39  }
  0xc0   : > { %573 = vst [vmem:[%s195_s17 + $0x18] sm:$0xff] %v569_v40  }
  0xc1 PF: > { %s13_s14 = sadd.s32 1, %s645_s14   ;;  %s741_s12 = smov %s641_s13 }
  0xc2   : > { %p10_p5 = scmp.ge.s32.totalorder %s13_s14, 4   ;;  %s742_s13 = smov %s744_s15 }
  0xc4   :  { %12 = sbr.rel (!%p10_p5) target bundleno = 2 (0x2), region = 71 }

// kernel: variational_gcn_encoder.7
= control target key start
LH: loop header
LB: loop body
LE: loop exit
PB: predicated region body
PF: predicated region fallthrough
CT: control target
= control target key end

     0   :  { %s629_s12 = smov 0   ;;  %s631_s13 = smov 0   ;;  %s696_s0 = inlined_call_operand.vmem [shape: bf16[128,128], index: 0, kind: input, shape index: {}]   ;;  %s697_s1 = inlined_call_operand.vmem [shape: bf16[128,128], index: 1, kind: input, shape index: {}]   ;;  %s698_s2 = inlined_call_operand.vmem [shape: f32[1,128], index: 2, kind: input, shape index: {}]   ;;  %s699_s3 = inlined_call_operand.vmem [shape: f32[128,128], index: 3, kind: output, shape index: {}]  }
   0x1   :  { %s633_s14 = smov 0  }
   0x2 LB: > { %s25_s15 = sadd.s32 1, %s603_s13  ;;  %p468_p0 = scmp.ge.s32.totalorder %s607_s14, 1  ;;  %s607_s14 = sphi %s633_s14, %s13_s14   ;;  %s603_s13 = sphi %s631_s13, %s701_s13   ;;  %s599_s12 = sphi %s629_s12, %s700_s12  }
   0x3   : > { %p27_p1 = scmp.ge.s32.totalorder %s25_s15, 2  ;;  %p155_p2 = scmp.lt.s32.totalorder %s607_s14, 3 }
   0x5   : > { %s703_s15 = smov (%p27_p1, %s25_s15), 0  ;;  %p156_p3 = pnand %p468_p0, %p155_p2 }
   0x6   : > { %s469_s24 = sshll.u32 (!%p156_p3), %s599_s12, 3 }
   0x7   : > { %159 = sbr.rel (%p156_p3) target bundleno = 189 (0xbd), region = 32  ;;  %p183_p4 = scmp.lt.s32.totalorder (!%p156_p3), %s469_s24, 15 }
   0xc   : > { %v530_v0 = vld [vmem:[%s697_s1 + $0x38] sm:$0xff]  ;;  %v529_v1 = vld [vmem:[%s697_s1 + $0x30] sm:$0xff]  ;;  %v528_v2 = vld [vmem:[%s697_s1 + $0x28] sm:$0xff]  ;;  %s705_s24 = smov (!%p183_p4, %s469_s24), 15 }
   0xd   : > { %318 = vmatpush.bf16.msra.mxu0 %v530_v0  ;;  %535 = vmatpush.bf16.msra.mxu1 %v530_v0  ;;  %v527_v3 = vld [vmem:[%s697_s1 + $0x20] sm:$0xff]  ;;  %v526_v4 = vld [vmem:[%s697_s1 + $0x18] sm:$0xff]  ;;  %v525_v5 = vld [vmem:[%s697_s1 + $0x10] sm:$0xff]  ;;  %s470_s4 = sshll.u32 %s705_s24, 2  ;;  %s472_s10 = sshll.u32 %s705_s24, 3 }
   0xe   : > { %536 = vmatpush.bf16.msra.mxu2 %v530_v0  ;;  %537 = vmatpush.bf16.msra.mxu3 %v530_v0  ;;  %v524_v6 = vld [vmem:[%s697_s1 + $0x8] sm:$0xff]  ;;  %v523_v7 = vld [vmem:[%s697_s1] sm:$0xff]  ;;  %s189_s9 = scalar_lea.vmem %s696_s0, %s470_s4  ;;  %s195_s18 = scalar_lea.vmem %s699_s3, %s472_s10 }
   0xf   : > { %v531_v8 = vld [vmem:[%s189_s9] sm:$0xff]  ;;  %v532_v9 = vld [vmem:[%s189_s9 + $0x8] sm:$0xff]  ;;  %v533_v10 = vld [vmem:[%s189_s9 + $0x10] sm:$0xff] }
  0x10   : > { %v534_v11 = vld [vmem:[%s189_s9 + $0x18] sm:$0xff]  ;;  %v584_v12 = vld [vmem:[%s698_s2] ss:$0 sm:$0xff] }
  0x11   : > { %319 = vmatpush.bf16.msra.mxu0 %v529_v1  ;;  %538 = vmatpush.bf16.msra.mxu1 %v529_v1 }
  0x12   : > { %539 = vmatpush.bf16.msra.mxu2 %v529_v1  ;;  %540 = vmatpush.bf16.msra.mxu3 %v529_v1 }
  0x15   : > { %320 = vmatpush.bf16.msra.mxu0 %v528_v2  ;;  %541 = vmatpush.bf16.msra.mxu1 %v528_v2 }
  0x16   : > { %542 = vmatpush.bf16.msra.mxu2 %v528_v2  ;;  %543 = vmatpush.bf16.msra.mxu3 %v528_v2 }
  0x19   : > { %321 = vmatpush.bf16.msra.mxu0 %v527_v3  ;;  %544 = vmatpush.bf16.msra.mxu1 %v527_v3 }
  0x1a   : > { %545 = vmatpush.bf16.msra.mxu2 %v527_v3  ;;  %546 = vmatpush.bf16.msra.mxu3 %v527_v3 }
  0x1d   : > { %322 = vmatpush.bf16.msra.mxu0 %v526_v4  ;;  %547 = vmatpush.bf16.msra.mxu1 %v526_v4 }
  0x1e   : > { %548 = vmatpush.bf16.msra.mxu2 %v526_v4  ;;  %549 = vmatpush.bf16.msra.mxu3 %v526_v4 }
  0x21   : > { %323 = vmatpush.bf16.msra.mxu0 %v525_v5  ;;  %550 = vmatpush.bf16.msra.mxu1 %v525_v5 }
  0x22   : > { %551 = vmatpush.bf16.msra.mxu2 %v525_v5  ;;  %552 = vmatpush.bf16.msra.mxu3 %v525_v5 }
  0x25   : > { %324 = vmatpush.bf16.msra.mxu0 %v524_v6  ;;  %553 = vmatpush.bf16.msra.mxu1 %v524_v6 }
  0x26   : > { %554 = vmatpush.bf16.msra.mxu2 %v524_v6  ;;  %555 = vmatpush.bf16.msra.mxu3 %v524_v6 }
  0x29   : > { %325 = vmatpush.bf16.msra.mxu0 %v523_v7  ;;  %556 = vmatpush.bf16.msra.mxu1 %v523_v7 }
  0x2a   : > { %557 = vmatpush.bf16.msra.mxu2 %v523_v7  ;;  %558 = vmatpush.bf16.msra.mxu3 %v523_v7 }
  0x2c   : > { %326 = vmatmul.bf16.vlgmr.msra.gmra.mxu0 %v531_v8  ;;  %331 = vmatmul.bf16.vlgmr.msra.gmra.mxu1 %v532_v9 }
  0x2d   : > { %336 = vmatmul.bf16.vlgmr.msra.gmra.mxu2 %v533_v10  ;;  %341 = vmatmul.bf16.vlgmr.msra.gmra.mxu3 %v534_v11 }
  0xa9   : > { %v327_v13 = vpop.f32.mrf.mxu0  ;;  %v332_v14 = vpop.f32.mrf.mxu1 }
  0xaa   : > { %v378_v15 = vadd.f32 %v584_v12, %v327_v13  ;;  %v380_v16 = vadd.f32 %v584_v12, %v332_v14 }
  0xac   : > { %386 = vst [vmem:[%s195_s18] sm:$0xff] %v378_v15 }
  0xad   : > { %388 = vst [vmem:[%s195_s18 + $0x10] sm:$0xff] %v380_v16 }
  0xb0   : > { %v337_v17 = vpop.f32.mrf.mxu2  ;;  %v342_v18 = vpop.f32.mrf.mxu3 }
  0xb1   : > { %v329_v19 = vpop.f32.mrf.mxu0  ;;  %v334_v20 = vpop.f32.mrf.mxu1  ;;  %v382_v21 = vadd.f32 %v584_v12, %v337_v17  ;;  %v384_v22 = vadd.f32 %v584_v12, %v342_v18 }
  0xb2   : > { %v379_v23 = vadd.f32 %v584_v12, %v329_v19  ;;  %v381_v24 = vadd.f32 %v584_v12, %v334_v20 }
  0xb3   : > { %390 = vst [vmem:[%s195_s18 + $0x20] sm:$0xff] %v382_v21 }
  0xb4   : > { %392 = vst [vmem:[%s195_s18 + $0x30] sm:$0xff] %v384_v22 }
  0xb5   : > { %387 = vst [vmem:[%s195_s18 + $0x8] sm:$0xff] %v379_v23 }
  0xb6   : > { %389 = vst [vmem:[%s195_s18 + $0x18] sm:$0xff] %v381_v24 }
  0xb8   : > { %v339_v25 = vpop.f32.mrf.mxu2  ;;  %v344_v26 = vpop.f32.mrf.mxu3 }
  0xb9   : > { %v383_v27 = vadd.f32 %v584_v12, %v339_v25  ;;  %v385_v28 = vadd.f32 %v584_v12, %v344_v26 }
  0xbb   : > { %391 = vst [vmem:[%s195_s18 + $0x28] sm:$0xff] %v383_v27 }
  0xbc   : > { %393 = vst [vmem:[%s195_s18 + $0x38] sm:$0xff] %v385_v28 }
  0xbd PF: > { %s13_s14 = sadd.s32 1, %s607_s14   ;;  %s700_s12 = smov %s603_s13 }
  0xbe   : > { %p10_p5 = scmp.ge.s32.totalorder %s13_s14, 4   ;;  %s701_s13 = smov %s703_s15 }
  0xc0   :  { %12 = sbr.rel (!%p10_p5) target bundleno = 2 (0x2), region = 71 }

</bundles_post_ra>
